<compile_context>
chip_gen: v7x
topology: tpu7x:2x2x1
jax: 0.10.0
libtpu: 0.0.40
codegen_flags: <defaults>
</compile_context>

<pallas_src>
import functools

import jax
import jax.numpy as jnp
from jax.experimental import pallas as pl
from jax.experimental.pallas import tpu as pltpu

BN_EPS = 1e-5
LANE = 128


def _round_up(n: int, m: int) -> int:
    return ((n + m - 1) // m) * m


def _pad2(a, rows: int, cols: int, dtype):
    out = jnp.zeros((rows, cols), dtype)
    return out.at[: a.shape[0], : a.shape[1]].set(a.astype(dtype))


def _make_net_kernel(num_layers: int, batch: int, use_bn: bool):
    inv_n = 1.0 / float(batch)

    def kernel(x_ref, wf_ref, wh_ref, b_ref, g_ref, bt_ref, wo_ref, bo_ref,
               out_ref, lin_scr, act_scr):
        l = pl.program_id(0)

        # ---- Linear (bf16 operands on the MXU, f32 accumulate into f32 scratch) ----
        @pl.when(l == 0)
        def _():
            lin_scr[...] = jnp.dot(x_ref[...], wf_ref[...],
                                   preferred_element_type=jnp.float32)

        @pl.when(l > 0)
        def _():
            lin_scr[...] = jnp.dot(act_scr[...], wh_ref[0],
                                   preferred_element_type=jnp.float32)

        # ---- bias + ReLU (f32, VPU) ----
        h = jnp.maximum(lin_scr[...] + b_ref[0], 0.0)

        # ---- BatchNorm1d: training-mode batch statistics, biased variance ----
        if use_bn:
            # single pass over h: sum and sum-of-squares (f32 accumulation)
            s1 = jnp.sum(h, axis=0, keepdims=True)
            s2 = jnp.sum(h * h, axis=0, keepdims=True)
            mean = s1 * inv_n
            var = s2 * inv_n - mean * mean
            scale = g_ref[0] * jax.lax.rsqrt(var + BN_EPS)   # rsqrt -> EUP slot
            shift = bt_ref[0] - mean * scale
            h = h * scale + shift                            # one FMA per element

        # Dropout(rate=0.0) is the identity.
        # TODO(synk): dropout_rate > 0 would need pltpu.prng_seed/prng_random_bits masking.
        act_scr[...] = h.astype(jnp.bfloat16)                # bf16 feeds the next matmul

        # ---- final Linear on the last layer iteration ----
        @pl.when(l == num_layers - 1)
        def _():
            out_ref[...] = (
                jnp.dot(act_scr[...], wo_ref[...],
                        preferred_element_type=jnp.float32)
                + bo_ref[...]
            )

    return kernel


def init_params(key, input_size, hidden_size, output_size, number_of_layers):
    """Kaiming-normal weights / zero biases, matching Net.init_weights() (logical shapes)."""
    params = []
    in_dim = input_size
    keys = jax.random.split(key, number_of_layers + 1)
    for layer in range(number_of_layers):
        w = jax.random.normal(keys[layer], (in_dim, hidden_size), jnp.float32) * jnp.sqrt(
            2.0 / in_dim)
        b = jnp.zeros((1, hidden_size), jnp.float32)
        gamma = jnp.ones((1, hidden_size), jnp.float32)   # BatchNorm1d weight init
        beta = jnp.zeros((1, hidden_size), jnp.float32)   # BatchNorm1d bias init
        params += [w, b, gamma, beta]
        in_dim = hidden_size
    w_out = jax.random.normal(
        keys[number_of_layers], (in_dim, output_size), jnp.float32) * jnp.sqrt(2.0 / in_dim)
    b_out = jnp.zeros((1, output_size), jnp.float32)
    params += [w_out, b_out]
    return params


def pack_params(params, input_size, hidden_size, output_size, number_of_layers):
    """Pad lane dims to 128, cast matmul weights to bf16, stack per-layer params for the grid."""
    in_pad = _round_up(input_size, LANE)
    h_pad = _round_up(hidden_size, LANE)
    out_pad = _round_up(output_size, LANE)
    L = number_of_layers

    w_first = _pad2(params[0], in_pad, h_pad, jnp.bfloat16)

    n_hid = max(L - 1, 1)                      # keep >=1 so the stacked array is never empty
    w_hid = jnp.zeros((n_hid, h_pad, h_pad), jnp.bfloat16)
    for i in range(1, L):
        w_hid = w_hid.at[i - 1].set(_pad2(params[4 * i], h_pad, h_pad, jnp.bfloat16))

    b_stack = jnp.zeros((L, 1, h_pad), jnp.float32)
    g_stack = jnp.zeros((L, 1, h_pad), jnp.float32)
    bt_stack = jnp.zeros((L, 1, h_pad), jnp.float32)
    for i in range(L):
        b_stack = b_stack.at[i, 0, :hidden_size].set(params[4 * i + 1].reshape(-1))
        g_stack = g_stack.at[i, 0, :hidden_size].set(params[4 * i + 2].reshape(-1))
        bt_stack = bt_stack.at[i, 0, :hidden_size].set(params[4 * i + 3].reshape(-1))

    w_out = _pad2(params[4 * L], h_pad, out_pad, jnp.bfloat16)
    b_out = jnp.zeros((1, out_pad), jnp.float32).at[0, :output_size].set(
        params[4 * L + 1].reshape(-1))
    return (w_first, w_hid, b_stack, g_stack, bt_stack, w_out, b_out)


@functools.partial(jax.jit,
                   static_argnames=("hidden_size", "output_size", "number_of_layers"))
def net_forward(x, packed, *, hidden_size, output_size, number_of_layers):
    w_first, w_hid, b_stack, g_stack, bt_stack, w_out, b_out = packed
    batch, in_size = x.shape
    in_pad, h_pad = w_first.shape
    out_pad = w_out.shape[1]
    L = number_of_layers
    use_bn = hidden_size > 1

    # pad the lane dim and pre-cast to bf16 (lane-dense, halves the input DMA)
    x_pad = jnp.zeros((batch, in_pad), jnp.bfloat16).at[:, :in_size].set(
        x.astype(jnp.bfloat16))

    kernel = _make_net_kernel(L, batch, use_bn)

    out_padded = pl.pallas_call(
        kernel,
        out_shape=jax.ShapeDtypeStruct((batch, out_pad), jnp.float32),
        grid=(L,),
        in_specs=[
            pl.BlockSpec((batch, in_pad), lambda l: (0, 0)),            # x (resident, bf16)
            pl.BlockSpec((in_pad, h_pad), lambda l: (0, 0)),            # first-layer W (resident)
            pl.BlockSpec((1, h_pad, h_pad),
                         lambda l: (jnp.maximum(l - 1, 0), 0, 0)),      # streamed hidden W_l
            pl.BlockSpec((1, 1, h_pad), lambda l: (l, 0, 0)),           # bias_l
            pl.BlockSpec((1, 1, h_pad), lambda l: (l, 0, 0)),           # BN gamma_l
            pl.BlockSpec((1, 1, h_pad), lambda l: (l, 0, 0)),           # BN beta_l
            pl.BlockSpec((h_pad, out_pad), lambda l: (0, 0)),           # output W (resident)
            pl.BlockSpec((1, out_pad), lambda l: (0, 0)),               # output bias (resident)
        ],
        out_specs=pl.BlockSpec((batch, out_pad), lambda l: (0, 0)),
        scratch_shapes=[
            pltpu.VMEM((batch, h_pad), jnp.float32),    # pre-activation linear result (f32)
            pltpu.VMEM((batch, h_pad), jnp.bfloat16),   # persistent inter-layer activations
        ],
        compiler_params=pltpu.CompilerParams(
            dimension_semantics=("arbitrary",),      # layer axis carries state via scratch
            vmem_limit_bytes=48 * 1024 * 1024,       # sized for v7x's 64 MiB VMEM (ok on v5e/v6e)
        ),
    )(x_pad, w_first, w_hid, b_stack, g_stack, bt_stack, w_out, b_out)

    # slice the logical (unpadded) output columns
    return out_padded[:, :output_size]


def reference_forward(x, params, number_of_layers, hidden_size):
    """Plain-JAX reference mirroring the kernel's bf16-matmul / f32-stats numerics."""
    use_bn = hidden_size > 1
    h = x
    idx = 0
    for _ in range(number_of_layers):
        w, b, gamma, beta = params[idx: idx + 4]
        idx += 4
        h = jnp.dot(h.astype(jnp.bfloat16), w.astype(jnp.bfloat16),
                    preferred_element_type=jnp.float32) + b
        h = jnp.maximum(h, 0.0)
        if use_bn:
            mean = jnp.mean(h, axis=0, keepdims=True)
            var = jnp.mean(h * h, axis=0, keepdims=True) - mean * mean
            h = (h - mean) * jax.lax.rsqrt(var + BN_EPS) * gamma + beta
    w_out, b_out = params[idx], params[idx + 1]
    return jnp.dot(h.astype(jnp.bfloat16), w_out.astype(jnp.bfloat16),
                   preferred_element_type=jnp.float32) + b_out


if __name__ == "__main__":
    INPUT_SIZE = 16
    HIDDEN_SIZE = 32
    OUTPUT_SIZE = 8
    NUMBER_OF_LAYERS = 2
    BATCH = 8

    key = jax.random.PRNGKey(0)
    kx, kp = jax.random.split(key)
    x = jax.random.normal(kx, (BATCH, INPUT_SIZE), jnp.float32)
    params = init_params(kp, INPUT_SIZE, HIDDEN_SIZE, OUTPUT_SIZE, NUMBER_OF_LAYERS)
    packed = pack_params(params, INPUT_SIZE, HIDDEN_SIZE, OUTPUT_SIZE, NUMBER_OF_LAYERS)

    out = net_forward(x, packed, hidden_size=HIDDEN_SIZE,
                      output_size=OUTPUT_SIZE, number_of_layers=NUMBER_OF_LAYERS)
    out = jax.block_until_ready(out)

    ref = reference_forward(x, params, NUMBER_OF_LAYERS, HIDDEN_SIZE)
    assert out.shape == (BATCH, OUTPUT_SIZE)
    assert jnp.allclose(out, ref, atol=2e-2, rtol=2e-2), float(jnp.max(jnp.abs(out - ref)))
    print("KERNEL_OK")
</pallas_src>

<mosaic_0001>
module attributes {stable_mosaic.version = 11 : i64} {
  func.func @kernel(%arg0: i32, %arg1: memref<8x128xbf16, #tpu.memory_space<vmem>>, %arg2: memref<128x128xbf16, #tpu.memory_space<vmem>>, %arg3: memref<1x128x128xbf16, #tpu.memory_space<vmem>>, %arg4: memref<1x1x128xf32, #tpu.memory_space<vmem>>, %arg5: memref<1x1x128xf32, #tpu.memory_space<vmem>>, %arg6: memref<1x1x128xf32, #tpu.memory_space<vmem>>, %arg7: memref<128x128xbf16, #tpu.memory_space<vmem>>, %arg8: memref<1x128xf32, #tpu.memory_space<vmem>>, %arg9: memref<8x128xf32, #tpu.memory_space<vmem>>, %arg10: memref<8x128xf32, #tpu.memory_space<vmem>>, %arg11: memref<8x128xbf16, #tpu.memory_space<vmem>>) attributes {dimension_semantics = [#tpu.dimension_semantics<arbitrary>], iteration_bounds = array<i64: 2>, scalar_prefetch = 0 : i64, scratch_operands = 2 : i64, tpu.core_type = #tpu.core_type<tc>, window_params = [{pipeline_mode = #tpu.pipeline_mode<synchronous>, transform_indices = @transform_0, window_bounds = array<i64: 8, 128>}, {pipeline_mode = #tpu.pipeline_mode<synchronous>, transform_indices = @transform_1, window_bounds = array<i64: 128, 128>}, {transform_indices = @transform_2, window_bounds = array<i64: 1, 128, 128>}, {transform_indices = @transform_3, window_bounds = array<i64: 1, 1, 128>}, {transform_indices = @transform_4, window_bounds = array<i64: 1, 1, 128>}, {transform_indices = @transform_5, window_bounds = array<i64: 1, 1, 128>}, {pipeline_mode = #tpu.pipeline_mode<synchronous>, transform_indices = @transform_6, window_bounds = array<i64: 128, 128>}, {pipeline_mode = #tpu.pipeline_mode<synchronous>, transform_indices = @transform_7, window_bounds = array<i64: 1, 128>}, {pipeline_mode = #tpu.pipeline_mode<synchronous>, transform_indices = @transform_8, window_bounds = array<i64: 8, 128>}]} {
    %c0_i32 = arith.constant 0 : i32
    %0 = arith.cmpi eq, %arg0, %c0_i32 : i32
    %1 = arith.extui %0 : i1 to i32
    %c0_i32_0 = arith.constant 0 : i32
    %2 = arith.cmpi ne, %1, %c0_i32_0 : i32
    scf.if %2 {
      %c0_21 = arith.constant 0 : index
      %c0_22 = arith.constant 0 : index
      %43 = vector.load %arg1[%c0_21, %c0_22] : memref<8x128xbf16, #tpu.memory_space<vmem>>, vector<8x128xbf16>
      %c0_23 = arith.constant 0 : index
      %c0_24 = arith.constant 0 : index
      %44 = vector.load %arg2[%c0_23, %c0_24] : memref<128x128xbf16, #tpu.memory_space<vmem>>, vector<128x128xbf16>
      %cst_25 = arith.constant dense<0.000000e+00> : vector<8x128xf32>
      %45 = tpu.matmul %43, %44, %cst_25 {dimension_numbers = #tpu.dot_dimension_numbers<[1], [0], [0], [1], [0, 0, 1, 1], [], []>} : vector<8x128xbf16>, vector<128x128xbf16>, vector<8x128xf32> -> vector<8x128xf32>
      %c0_26 = arith.constant 0 : index
      %c0_27 = arith.constant 0 : index
      %46 = vector.load %arg10[%c0_26, %c0_27] : memref<8x128xf32, #tpu.memory_space<vmem>>, vector<8x128xf32>
      tpu.vector_store %arg10[%c0_26, %c0_27], %45 {strides = array<i32>} : memref<8x128xf32, #tpu.memory_space<vmem>>, vector<8x128xf32>,
    } else {
    }
    %c0_i32_1 = arith.constant 0 : i32
    %3 = arith.cmpi sgt, %arg0, %c0_i32_1 : i32
    %4 = arith.extui %3 : i1 to i32
    %c0_i32_2 = arith.constant 0 : i32
    %5 = arith.cmpi ne, %4, %c0_i32_2 : i32
    scf.if %5 {
      %c0_21 = arith.constant 0 : index
      %c0_22 = arith.constant 0 : index
      %43 = vector.load %arg11[%c0_21, %c0_22] : memref<8x128xbf16, #tpu.memory_space<vmem>>, vector<8x128xbf16>
      %c0_23 = arith.constant 0 : index
      %c0_24 = arith.constant 0 : index
      %c0_25 = arith.constant 0 : index
      %44 = vector.load %arg3[%c0_23, %c0_24, %c0_25] : memref<1x128x128xbf16, #tpu.memory_space<vmem>>, vector<1x128x128xbf16>
      %45 = vector.shape_cast %44 : vector<1x128x128xbf16> to vector<128x128xbf16>
      %cst_26 = arith.constant dense<0.000000e+00> : vector<8x128xf32>
      %46 = tpu.matmul %43, %45, %cst_26 {dimension_numbers = #tpu.dot_dimension_numbers<[1], [0], [0], [1], [0, 0, 1, 1], [], []>} : vector<8x128xbf16>, vector<128x128xbf16>, vector<8x128xf32> -> vector<8x128xf32>
      %c0_27 = arith.constant 0 : index
      %c0_28 = arith.constant 0 : index
      %47 = vector.load %arg10[%c0_27, %c0_28] : memref<8x128xf32, #tpu.memory_space<vmem>>, vector<8x128xf32>
      tpu.vector_store %arg10[%c0_27, %c0_28], %46 {strides = array<i32>} : memref<8x128xf32, #tpu.memory_space<vmem>>, vector<8x128xf32>,
    } else {
    }
    %c0 = arith.constant 0 : index
    %c0_3 = arith.constant 0 : index
    %6 = vector.load %arg10[%c0, %c0_3] : memref<8x128xf32, #tpu.memory_space<vmem>>, vector<8x128xf32>
    %c0_4 = arith.constant 0 : index
    %c0_5 = arith.constant 0 : index
    %c0_6 = arith.constant 0 : index
    %7 = vector.load %arg4[%c0_4, %c0_5, %c0_6] : memref<1x1x128xf32, #tpu.memory_space<vmem>>, vector<1x1x128xf32>
    %8 = vector.shape_cast %7 : vector<1x1x128xf32> to vector<1x128xf32>
    %9 = vector.broadcast %8 : vector<1x128xf32> to vector<8x128xf32>
    %10 = arith.addf %6, %9 : vector<8x128xf32>
    %cst = arith.constant 0.000000e+00 : f32
    %11 = vector.broadcast %cst : f32 to vector<8x128xf32>
    %12 = arith.maximumf %10, %11 : vector<8x128xf32>
    %cst_7 = arith.constant dense<0.000000e+00> : vector<128xf32>
    %13 = vector.multi_reduction <add>, %12, %cst_7 [0] : vector<8x128xf32> to vector<128xf32>
    %14 = vector.shape_cast %13 : vector<128xf32> to vector<1x128xf32>
    %15 = arith.mulf %12, %12 : vector<8x128xf32>
    %cst_8 = arith.constant dense<0.000000e+00> : vector<128xf32>
    %16 = vector.multi_reduction <add>, %15, %cst_8 [0] : vector<8x128xf32> to vector<128xf32>
    %17 = vector.shape_cast %16 : vector<128xf32> to vector<1x128xf32>
    %cst_9 = arith.constant 1.250000e-01 : f32
    %18 = vector.broadcast %cst_9 : f32 to vector<1x128xf32>
    %19 = arith.mulf %14, %18 : vector<1x128xf32>
    %cst_10 = arith.constant 1.250000e-01 : f32
    %20 = vector.broadcast %cst_10 : f32 to vector<1x128xf32>
    %21 = arith.mulf %17, %20 : vector<1x128xf32>
    %22 = arith.mulf %19, %19 : vector<1x128xf32>
    %23 = arith.subf %21, %22 : vector<1x128xf32>
    %c0_11 = arith.constant 0 : index
    %c0_12 = arith.constant 0 : index
    %c0_13 = arith.constant 0 : index
    %24 = vector.load %arg5[%c0_11, %c0_12, %c0_13] : memref<1x1x128xf32, #tpu.memory_space<vmem>>, vector<1x1x128xf32>
    %25 = vector.shape_cast %24 : vector<1x1x128xf32> to vector<1x128xf32>
    %cst_14 = arith.constant 9.99999974E-6 : f32
    %26 = vector.broadcast %cst_14 : f32 to vector<1x128xf32>
    %27 = arith.addf %23, %26 : vector<1x128xf32>
    %28 = math.rsqrt %27 : vector<1x128xf32>
    %29 = arith.mulf %25, %28 : vector<1x128xf32>
    %c0_15 = arith.constant 0 : index
    %c0_16 = arith.constant 0 : index
    %c0_17 = arith.constant 0 : index
    %30 = vector.load %arg6[%c0_15, %c0_16, %c0_17] : memref<1x1x128xf32, #tpu.memory_space<vmem>>, vector<1x1x128xf32>
    %31 = vector.shape_cast %30 : vector<1x1x128xf32> to vector<1x128xf32>
    %32 = arith.mulf %19, %29 : vector<1x128xf32>
    %33 = arith.subf %31, %32 : vector<1x128xf32>
    %34 = vector.broadcast %29 : vector<1x128xf32> to vector<8x128xf32>
    %35 = arith.mulf %12, %34 : vector<8x128xf32>
    %36 = vector.broadcast %33 : vector<1x128xf32> to vector<8x128xf32>
    %37 = arith.addf %35, %36 : vector<8x128xf32>
    %38 = arith.truncf %37 : vector<8x128xf32> to vector<8x128xbf16>
    %c0_18 = arith.constant 0 : index
    %c0_19 = arith.constant 0 : index
    %39 = vector.load %arg11[%c0_18, %c0_19] : memref<8x128xbf16, #tpu.memory_space<vmem>>, vector<8x128xbf16>
    tpu.vector_store %arg11[%c0_18, %c0_19], %38 {strides = array<i32>} : memref<8x128xbf16, #tpu.memory_space<vmem>>, vector<8x128xbf16>,
    %c1_i32 = arith.constant 1 : i32
    %40 = arith.cmpi eq, %arg0, %c1_i32 : i32
    %41 = arith.extui %40 : i1 to i32
    %c0_i32_20 = arith.constant 0 : i32
    %42 = arith.cmpi ne, %41, %c0_i32_20 : i32
    scf.if %42 {
      %c0_21 = arith.constant 0 : index
      %c0_22 = arith.constant 0 : index
      %43 = vector.load %arg11[%c0_21, %c0_22] : memref<8x128xbf16, #tpu.memory_space<vmem>>, vector<8x128xbf16>
      %c0_23 = arith.constant 0 : index
      %c0_24 = arith.constant 0 : index
      %44 = vector.load %arg7[%c0_23, %c0_24] : memref<128x128xbf16, #tpu.memory_space<vmem>>, vector<128x128xbf16>
      %cst_25 = arith.constant dense<0.000000e+00> : vector<8x128xf32>
      %45 = tpu.matmul %43, %44, %cst_25 {dimension_numbers = #tpu.dot_dimension_numbers<[1], [0], [0], [1], [0, 0, 1, 1], [], []>} : vector<8x128xbf16>, vector<128x128xbf16>, vector<8x128xf32> -> vector<8x128xf32>
      %c0_26 = arith.constant 0 : index
      %c0_27 = arith.constant 0 : index
      %46 = vector.load %arg8[%c0_26, %c0_27] : memref<1x128xf32, #tpu.memory_space<vmem>>, vector<1x128xf32>
      %47 = vector.broadcast %46 : vector<1x128xf32> to vector<8x128xf32>
      %48 = arith.addf %45, %47 : vector<8x128xf32>
      %c0_28 = arith.constant 0 : index
      %c0_29 = arith.constant 0 : index
      %49 = vector.load %arg9[%c0_28, %c0_29] : memref<8x128xf32, #tpu.memory_space<vmem>>, vector<8x128xf32>
      tpu.vector_store %arg9[%c0_28, %c0_29], %48 {strides = array<i32>} : memref<8x128xf32, #tpu.memory_space<vmem>>, vector<8x128xf32>,
    } else {
    }
    return
  }
  func.func @transform_0(%arg0: i32) -> (i32, i32) {
    %c0_i32 = arith.constant 0 : i32
    %c0_i32_0 = arith.constant 0 : i32
    %c0_i32_1 = arith.constant 0 : i32
    return %c0_i32, %c0_i32_0 : i32, i32
  }
  func.func @transform_1(%arg0: i32) -> (i32, i32) {
    %c0_i32 = arith.constant 0 : i32
    %c0_i32_0 = arith.constant 0 : i32
    %c0_i32_1 = arith.constant 0 : i32
    return %c0_i32, %c0_i32_0 : i32, i32
  }
  func.func @transform_2(%arg0: i32) -> (i32, i32, i32) {
    %c1_i32 = arith.constant 1 : i32
    %0 = arith.subi %arg0, %c1_i32 : i32
    %c0_i32 = arith.constant 0 : i32
    %1 = arith.maxsi %0, %c0_i32 : i32
    %c0_i32_0 = arith.constant 0 : i32
    %c0_i32_1 = arith.constant 0 : i32
    %c0_i32_2 = arith.constant 0 : i32
    return %1, %c0_i32_0, %c0_i32_1 : i32, i32, i32
  }
  func.func @transform_3(%arg0: i32) -> (i32, i32, i32) {
    %c0_i32 = arith.constant 0 : i32
    %c0_i32_0 = arith.constant 0 : i32
    %c0_i32_1 = arith.constant 0 : i32
    return %arg0, %c0_i32, %c0_i32_0 : i32, i32, i32
  }
  func.func @transform_4(%arg0: i32) -> (i32, i32, i32) {
    %c0_i32 = arith.constant 0 : i32
    %c0_i32_0 = arith.constant 0 : i32
    %c0_i32_1 = arith.constant 0 : i32
    return %arg0, %c0_i32, %c0_i32_0 : i32, i32, i32
  }
  func.func @transform_5(%arg0: i32) -> (i32, i32, i32) {
    %c0_i32 = arith.constant 0 : i32
    %c0_i32_0 = arith.constant 0 : i32
    %c0_i32_1 = arith.constant 0 : i32
    return %arg0, %c0_i32, %c0_i32_0 : i32, i32, i32
  }
  func.func @transform_6(%arg0: i32) -> (i32, i32) {
    %c0_i32 = arith.constant 0 : i32
    %c0_i32_0 = arith.constant 0 : i32
    %c0_i32_1 = arith.constant 0 : i32
    return %c0_i32, %c0_i32_0 : i32, i32
  }
  func.func @transform_7(%arg0: i32) -> (i32, i32) {
    %c0_i32 = arith.constant 0 : i32
    %c0_i32_0 = arith.constant 0 : i32
    %c0_i32_1 = arith.constant 0 : i32
    return %c0_i32, %c0_i32_0 : i32, i32
  }
  func.func @transform_8(%arg0: i32) -> (i32, i32) {
    %c0_i32 = arith.constant 0 : i32
    %c0_i32_0 = arith.constant 0 : i32
    %c0_i32_1 = arith.constant 0 : i32
    return %c0_i32, %c0_i32_0 : i32, i32
  }
}

</mosaic_0001>

<bundles_post_ra>
// kernel: net_forward.1
= control target key start
LH: loop header
LB: loop body
LE: loop exit
PB: predicated region body
PF: predicated region fallthrough
CT: control target
= control target key end

     0   :  { %s1597_s0 = inlined_call_operand.vmem [shape: bf16[8,128], index: 0, kind: input, shape index: {}]   ;;  %s1598_s1 = inlined_call_operand.hbm [shape: bf16[128,128], index: 1, kind: input, shape index: {}]   ;;  %s1599_s2 = inlined_call_operand.hbm [shape: bf16[1,128,128], index: 2, kind: input, shape index: {}]   ;;  %s1600_s3 = inlined_call_operand.vmem [shape: f32[2,1,128], index: 3, kind: input, shape index: {}]   ;;  %s1601_s4 = inlined_call_operand.vmem [shape: f32[2,1,128], index: 4, kind: input, shape index: {}]   ;;  %s1602_s5 = inlined_call_operand.vmem [shape: f32[2,1,128], index: 5, kind: input, shape index: {}]   ;;  %s1603_s6 = inlined_call_operand.hbm [shape: bf16[128,128], index: 6, kind: input, shape index: {}]   ;;  %s1604_s7 = inlined_call_operand.vmem [shape: f32[1,128], index: 7, kind: input, shape index: {}]   ;;  %s1605_s8 = inlined_call_operand.hbm [shape: f32[8,128], index: 8, kind: output, shape index: {}]  }
   0x1   :  { %1612 = sst [smem:[#allocation15_spill]] %s1605_s8 }
   0x2   :  { %13 = vsyncpa [#allocation5], 0 }
   0x3   :  { %14 = vsyncpa [#allocation8], 0 }
   0x4   :  { %16 = vsyncpa [#allocation8 + $0x1], 0 }
   0x5   :  { %17 = vsyncpa [#allocation6], 0  ;;  %s1342_s27 = smov 0   ;;  %s1344_s28 = smov 0  }
   0x6   :  { %s1346_s29 = smov 0   ;;  %s1348_s30 = smov 0  }
   0x7 LB: > { %s1361_s9 = sadd.s32 4294967295, %s1283_s30   ;;  %p85_p0 = scmp.ne.s32.totalorder %s1279_s29, %s1275_s28  ;;  %s1283_s30 = sphi %s1348_s30, %s1631_s30   ;;  %s1279_s29 = sphi %s1346_s29, %s1630_s29   ;;  %s1275_s28 = sphi %s1344_s28, %s1629_s28   ;;  %s1271_s27 = sphi %s1342_s27, %s1628_s27  }
   0x8   : > { %p86_p1 = scmp.eq.s32.totalorder %s1283_s30, 0  ;;  %p91_p2 = scmp.ne.s32.totalorder %s1275_s28, %s1271_s27 }
   0x9   : > { %p1606_p3 = scmp.eq.s32.totalorder %s1361_s9, 0  ;;  %p891_p4 = scmp.ge.s32.totalorder %s1283_s30, 1 }
   0xa   : > { %p87_p5 = por %p86_p1, %p85_p0  ;;  %p243_p6 = scmp.lt.s32.totalorder %s1283_s30, 3 }
   0xb   : > { %p1372_p7 = por %p1606_p3, %p91_p2  ;;  %s1285_s12 = smov [#allocation9]  }
   0xc   : > { %p1377_p9 = pnand %p891_p4, %p243_p6  ;;  %s271_s13 = sshll.u32 %s1285_s12, 4  ;;  %s272_s13 = int_to_ptr.vmem [resolvable:$true] %s271_s13 }
   0xd   : > { %s1613_s10 = scalar_select %p1372_p7, 1, 0 }
   0xe   : > { %s1614_s11 = scalar_select %p1377_p9, 1, 0 }
   0xf   : > { %p1038_p10 = pneg %p1377_p9  ;;  %p1051_p12 = scmp.lt.s32.totalorder %s1283_s30, 2 }
  0x10   : > { %s1391_s15 = sadd.s32 1, %s1283_s30   ;;  %s1125_s19 = scalar_lea.hbm %s1603_s6, 1024 }
  0x11   : > { %p1385_p11 = pnand %p1038_p10, %p1606_p3  ;;  %p1393_p13 = pnand %p1051_p12, %p87_p5 }
  0x12   : > { %p1126_p0 = scmp.ne.s32.totalorder %s1603_s6, %s1125_s19  ;;  %p1132_p5 = scmp.lt.u32.totalorder %s1125_s19, %s1603_s6 }
  0x13   : > { %s1616_s16 = scalar_select %p1393_p13, 1, 0 }
  0x14   : > { %p1127_p1 = pneg %p1385_p11 }
  0x16   : > { %p1128_p2 = pnand %p1127_p1, %p1126_p0 }
  0x18   : > { %p1129_p4 = pneg %p1128_p2 }
  0x1a   : > { %p1134_p6 = pnand %p1132_p5, %p1129_p4 }
  0x1c   : > { %1137 = shalt.err (!%p1134_p6)
}
  0x1d   : > { %s1138_s24 = scalar_lea.vmem %s272_s13, 1024  ;;  %p1146_p3 = scmp.lt.s32.totalorder %s272_s13, %s272_s13 }
  0x1e   : > { %p1139_p10 = scmp.ne.s32.totalorder %s272_s13, %s1138_s24  ;;  %p1147_p7 = scmp.lt.s32.totalorder %s1138_s24, %s1138_s24 }
  0x20   : > { %p1141_p12 = pnand %p1139_p10, %p1127_p1  ;;  %p1148_p9 = por %p1147_p7, %p1146_p3 }
  0x22   : > { %p1142_p8 = pneg %p1141_p12 }
  0x24   : > { %p1149_p13 = pnand %p1148_p9, %p1142_p8 }
  0x26   : > { %1152 = shalt.err (!%p1149_p13)
}
  0x27   : > { %s1611_s25 = smov 64   ;;  %s1287_s26 = smov 4  }
  0x28   : > { %1044 = dma.hbm_to_vmem [thread:$0]  (!%p1385_p11), %s1603_s6, 1024, %s272_s13, [#allocation8], %s1611_s25, %s1611_s25, %s1287_s26  }
  0x29   : > { %s1288_s17 = smov [#allocation4]   ;;  %s1153_s21 = scalar_lea.hbm %s1598_s1, 1024 }
  0x2a   : > { %s258_s18 = sshll.u32 %s1288_s17, 4  ;;  %p1154_p3 = scmp.ne.s32.totalorder %s1598_s1, %s1153_s21  ;;  %s259_s18 = int_to_ptr.vmem [resolvable:$true] %s258_s18 }
  0x2b   : > { %p1160_p9 = scmp.lt.u32.totalorder %s1153_s21, %s1598_s1 }
  0x2c   : > { %p1156_p7 = pnand %p1154_p3, %p1127_p1 }
  0x2e   : > { %p1157_p8 = pneg %p1156_p7 }
  0x30   : > { %p1162_p13 = pnand %p1160_p9, %p1157_p8 }
  0x32   : > { %1165 = shalt.err (!%p1162_p13)
}
  0x33   : > { %s1166_s13 = scalar_lea.vmem %s259_s18, 1024  ;;  %p1174_p6 = scmp.lt.s32.totalorder %s259_s18, %s259_s18 }
  0x34   : > { %p1167_p2 = scmp.ne.s32.totalorder %s259_s18, %s1166_s13  ;;  %p1175_p10 = scmp.lt.s32.totalorder %s1166_s13, %s1166_s13 }
  0x36   : > { %p1169_p4 = pnand %p1167_p2, %p1127_p1  ;;  %p1176_p12 = por %p1175_p10, %p1174_p6 }
  0x38   : > { %p1170_p5 = pneg %p1169_p4 }
  0x3a   : > { %p1177_p0 = pnand %p1176_p12, %p1170_p5 }
  0x3c   : > { %1180 = shalt.err (!%p1177_p0)
}
  0x3d   : > { %1041 = dma.hbm_to_vmem [thread:$0]  (!%p1385_p11), %s1598_s1, 1024, %s259_s18, [#allocation5], %s1611_s25, %s1611_s25, %s1287_s26  }
  0x3e   : > { %p1617_p1 = scmp.gt.s32.totalorder %s1361_s9, 0  ;;  %s890_s17 = sadd.s32 4294967295, %s1391_s15 }
  0x3f   : > { %p73_p0 = scmp.gt.s32.totalorder %s890_s17, 0  ;;  %s78_s19 = sadd.s32 1, %s1279_s29 }
  0x40   : > { %s71_s12 = scalar_select %p1617_p1, %s1361_s9, 0 }
  0x41   : > { %s288_s14 = sand.u32 1, %s1283_s30   ;;  %s290_s20 = sand.u32 1, %s1279_s29  }
  0x42   : > { %s1633_s17 = smov (!%p73_p0, %s890_s17), 0  ;;  %s895_s21 = sshll.u32 %s290_s20, 6 }
  0x43   : > { %s936_s22 = sshll.u32 %s71_s12, 10  ;;  %s75_s23 = ssub.s32 %s71_s12, %s1633_s17 }
  0x44   : > { %p76_p3 = scmp.eq.s32.totalorder %s75_s23, 0  ;;  %s1456_s8 = scalar_lea.hbm %s1599_s2, %s936_s22 }
  0x45   : > { %s292_s18 = scalar_lea.vmem [#allocation7], %s895_s21  ;;  %s1463_s30 = scalar_lea.sflag [#allocation8], %s288_s14 }
  0x46   : > { %s302_s27 = sshll.u32 %s292_s18, 4  ;;  %s1181_s20 = scalar_lea.hbm %s1456_s8, 1024  ;;  %s1461_s27 = int_to_ptr.vmem [resolvable:$true] %s302_s27 }
  0x47   : > { %s1459_s25 = scalar_select %p76_p3, %s1279_s29, %s78_s19  }
  0x48   : > { %p1182_p11 = scmp.ne.s32.totalorder %s1456_s8, %s1181_s20  ;;  %p1618_p7 = scmp.ne.s32.totalorder %s1616_s16, 0 }
  0x49   : > { %s1186_s22 = scalar_lea.hbm %s1599_s2, 1024  ;;  %p1187_p2 = scmp.lt.u32.totalorder %s1456_s8, %s1599_s2 }
  0x4a   : > { %p1183_p8 = pneg %p1618_p7  ;;  %p1188_p4 = scmp.lt.u32.totalorder %s1186_s22, %s1181_s20 }
  0x4b   : > { %p1190_p6 = scmp.lt.u32.totalorder %s1181_s20, %s1456_s8 }
  0x4c   : > { %p1184_p9 = pnand %p1183_p8, %p1182_p11  ;;  %p1189_p5 = por %p1188_p4, %p1187_p2 }
  0x4e   : > { %p1185_p13 = pneg %p1184_p9  ;;  %p1191_p10 = por %p1190_p6, %p1189_p5 }
  0x50   : > { %p1192_p12 = pnand %p1191_p10, %p1185_p13 }
  0x52   : > { %1195 = shalt.err (!%p1192_p12)
}
  0x53   : > { %s1196_s19 = scalar_lea.vmem %s1461_s27, 1024  ;;  %s1289_s14 = smov [#allocation7]  }
  0x54   : > { %p1197_p1 = scmp.ne.s32.totalorder %s1461_s27, %s1196_s19  ;;  %s1201_s24 = sshll.u32 %s1289_s14, 4  ;;  %s1202_s24 = int_to_ptr.vmem [resolvable:$false] %s1201_s24 }
  0x55   : > { %s1203_s13 = scalar_lea.vmem %s1202_s24, 2048  ;;  %p1204_p11 = scmp.lt.s32.totalorder %s1461_s27, %s1202_s24 }
  0x56   : > { %p1199_p0 = pnand %p1197_p1, %p1183_p8  ;;  %p1205_p9 = scmp.lt.s32.totalorder %s1203_s13, %s1196_s19 }
  0x58   : > { %p1200_p3 = pneg %p1199_p0  ;;  %p1206_p2 = por %p1205_p9, %p1204_p11 }
  0x5a   : > { %p1207_p4 = pnand %p1206_p2, %p1200_p3 }
  0x5c   : > { %1210 = shalt.err (!%p1207_p4)
}
  0x5d   : > { %s1619_s18 = smov 64   ;;  %p1620_p8 = scmp.ne.s32.totalorder %s1614_s11, 0 }
  0x5e   : > { %1048 = dma.hbm_to_vmem [thread:$0]  (!%p1618_p7), %s1456_s8, 1024, %s1461_s27, %s1463_s30, %s1619_s18, %s1619_s18, %s1287_s26  }
  0x5f   : > { %332 = sbr.rel (%p1620_p8) target bundleno = 916 (0x394), region = 52  ;;  %p1621_p13 = scmp.eq.s32.totalorder (!%p1620_p8), %s1361_s9, 0 }
  0x66   : > { %1254 = dma.done.wait (%p1621_p13), [#allocation5], 1024   ;;  %p1622_p5 = pmov %p1621_p13 }
  0x67   : > { %s338_s16 = sand.u32 1, %s1361_s9   ;;  %s340_s20 = sand.u32 1, %s1275_s28  }
  0x68   : > { %1256 = vsyncadd (%p1622_p5), [#allocation5], 4294966272  ;;  %s901_s12 = sshll.u32 %s340_s20, 6  ;;  %s339_s17 = scalar_lea.sflag [#allocation8], %s338_s16 }
  0x69   : > { %s1502_s22 = scalar_lea.vmem [#allocation7], %s901_s12  ;;  %p1623_p6 = scmp.ne.s32.totalorder %s1613_s10, 0 }
  0x6b   : > { %1258 = dma.done.wait (%p1623_p6), %s339_s17, 1024  }
  0x6c   : > { %1260 = vsyncadd (%p1623_p6), %s339_s17, 4294966272  ;;  %p1624_p7 = pmov %p1622_p5 }
  0x6d   : > { %p1625_p10 = pmov %p1622_p5 }
  0x6e   : > { %1262 = dma.done.wait (%p1624_p7), [#allocation8], 1024  }
  0x6f   : > { %1264 = vsyncadd (%p1625_p10), [#allocation8], 4294966272  ;;  %p386_p12 = scmp.lt.s32.totalorder %s1361_s9, 1  ;;  %p1626_p1 = scmp.ne.s32.totalorder %s1361_s9, 0 }
  0x70   : > { %v1099_v0 = vld [vmem:[#allocation4] sm:$0xff] (!%p1626_p1)   ;;  %v1290_v1 = vmov (!%p1626_p1), 0.0   ;;  %v1100_v2 = vld [vmem:[#allocation4 + $0x8] sm:$0xff] (!%p1626_p1)   ;;  %vm1291_vm0 = vmmov (!%p1626_p1), 0   ;;  %v1101_v3 = vld [vmem:[#allocation4 + $0x10] sm:$0xff] (!%p1626_p1)  }
  0x71   : > { %s1514_s11 = scalar_select %p386_p12, %s1361_s9, 1 }
  0x72   : > { %399 = sbr.rel (%p1626_p1) target bundleno = 361 (0x169), region = 68  ;;  %964 = vmatprep.subr.bf16.mxu0 (!%p1626_p1), %v1290_v1  ;;  %980 = vmatprep.mubr.msk.bf16.mxu0 (!%p1626_p1), %vm1291_vm0, %v1290_v1  ;;  %v1102_v4 = vld [vmem:[#allocation4 + $0x18] sm:$0xff] (!%p1626_p1)   ;;  %v1103_v5 = vld [vmem:[#allocation4 + $0x20] sm:$0xff] (!%p1626_p1)   ;;  %v1104_v6 = vld [vmem:[#allocation4 + $0x28] sm:$0xff] (!%p1626_p1)  }
  0x73   : > { %s388_s27 = scalar_lea.vmem %s1600_s3, %s1514_s11  ;;  %s391_s21 = scalar_lea.vmem %s1601_s4, %s1514_s11  ;;  %965 = vmatpush3.bf16.msra.mxu0 (!%p1626_p1), %v1099_v0  ;;  %v1105_v7 = vld [vmem:[#allocation4 + $0x30] sm:$0xff] (!%p1626_p1)   ;;  %v1106_v8 = vld [vmem:[#allocation4 + $0x38] sm:$0xff] (!%p1626_p1)  }
  0x74   : > { %s394_s14 = scalar_lea.vmem %s1602_s5, %s1514_s11  ;;  %966 = vmatprep.subr.bf16.mxu0 (!%p1626_p1), %v1290_v1  ;;  %v400_v9 = vld [vmem:[%s1597_s0] sm:$0xf] (!%p1626_p1) }
  0x77   : > { %967 = vmatpush3.bf16.msra.mxu0 (!%p1626_p1), %v1100_v2 }
  0x78   : > { %968 = vmatprep.subr.bf16.mxu0 (!%p1626_p1), %v1290_v1 }
  0x7b   : > { %969 = vmatpush3.bf16.msra.mxu0 %v1101_v3 }
  0x7c   : > { %970 = vmatprep.subr.bf16.mxu0 %v1290_v1 }
  0x7f   : > { %971 = vmatpush3.bf16.msra.mxu0 %v1102_v4 }
  0x80   : > { %972 = vmatprep.subr.bf16.mxu0 %v1290_v1 }
  0x83   : > { %973 = vmatpush3.bf16.msra.mxu0 %v1103_v5 }
  0x84   : > { %974 = vmatprep.subr.bf16.mxu0 %v1290_v1 }
  0x87   : > { %975 = vmatpush3.bf16.msra.mxu0 %v1104_v6 }
  0x88   : > { %976 = vmatprep.subr.bf16.mxu0 %v1290_v1 }
  0x8b   : > { %977 = vmatpush3.bf16.msra.mxu0 %v1105_v7 }
  0x8c   : > { %978 = vmatprep.subr.bf16.mxu0 %v1290_v1 }
  0x8f   : > { %979 = vmatpush3.bf16.msra.mxu0 %v1106_v8 }
  0x92   : > { %981 = vmatmul.mubr.bf16.vlgmr.msra.gmra.mrb[0].mxu0 %v400_v9 }
 0x165   : > { %v499_v10 = vpop.f32.mrb[0].mxu0 }
 0x166   : > { %505 = vst [vmem:[#allocation2] sm:$0xff] %v499_v10  ;;  %v982_v11 = vpop.f32.mrb[1].mxu0 }
 0x167   : > { %v502_v12 = vpop.f32.mrb[2].mxu0 }
 0x168   : > { %v983_v13 = vpop.f32.mrb[3].mxu0 }
 0x169 PF: > { %p912_p0 = scmp.le.s32.totalorder %s1361_s9, 0 }
 0x16a   : > { %v1107_v14 = vld [vmem:[%s1502_s22] sm:$0xff] (!%p912_p0)   ;;  %v1292_v15 = vmov (!%p912_p0), 0.0   ;;  %v1108_v16 = vld [vmem:[%s1502_s22 + $0x8] sm:$0xff] (!%p912_p0)   ;;  %vm1293_vm1 = vmmov (!%p912_p0), 0   ;;  %v1109_v17 = vld [vmem:[%s1502_s22 + $0x10] sm:$0xff] (!%p912_p0)  }
 0x16b   : > { %509 = sbr.rel (%p912_p0) target bundleno = 610 (0x262), region = 72  ;;  %984 = vmatprep.subr.bf16.mxu0 (!%p912_p0), %v1292_v15  ;;  %1000 = vmatprep.mubr.msk.bf16.mxu0 (!%p912_p0), %vm1293_vm1, %v1292_v15  ;;  %v1110_v18 = vld [vmem:[%s1502_s22 + $0x18] sm:$0xff] (!%p912_p0)   ;;  %v1111_v19 = vld [vmem:[%s1502_s22 + $0x20] sm:$0xff] (!%p912_p0)   ;;  %v1112_v20 = vld [vmem:[%s1502_s22 + $0x28] sm:$0xff] (!%p912_p0)  }
 0x16c   : > { %985 = vmatpush3.bf16.msra.mxu0 (!%p912_p0), %v1107_v14  ;;  %v1113_v21 = vld [vmem:[%s1502_s22 + $0x30] sm:$0xff] (!%p912_p0)   ;;  %v1114_v22 = vld [vmem:[%s1502_s22 + $0x38] sm:$0xff] (!%p912_p0)  }
 0x16d   : > { %986 = vmatprep.subr.bf16.mxu0 (!%p912_p0), %v1292_v15  ;;  %v510_v23 = vld [vmem:[#allocation3] sm:$0xf] (!%p912_p0) }
 0x170   : > { %987 = vmatpush3.bf16.msra.mxu0 (!%p912_p0), %v1108_v16 }
 0x171   : > { %988 = vmatprep.subr.bf16.mxu0 (!%p912_p0), %v1292_v15 }
 0x174   : > { %989 = vmatpush3.bf16.msra.mxu0 %v1109_v17 }
 0x175   : > { %990 = vmatprep.subr.bf16.mxu0 %v1292_v15 }
 0x178   : > { %991 = vmatpush3.bf16.msra.mxu0 %v1110_v18 }
 0x179   : > { %992 = vmatprep.subr.bf16.mxu0 %v1292_v15 }
 0x17c   : > { %993 = vmatpush3.bf16.msra.mxu0 %v1111_v19 }
 0x17d   : > { %994 = vmatprep.subr.bf16.mxu0 %v1292_v15 }
 0x180   : > { %995 = vmatpush3.bf16.msra.mxu0 %v1112_v20 }
 0x181   : > { %996 = vmatprep.subr.bf16.mxu0 %v1292_v15 }
 0x184   : > { %997 = vmatpush3.bf16.msra.mxu0 %v1113_v21 }
 0x185   : > { %998 = vmatprep.subr.bf16.mxu0 %v1292_v15 }
 0x188   : > { %999 = vmatpush3.bf16.msra.mxu0 %v1114_v22 }
 0x18b   : > { %1001 = vmatmul.mubr.bf16.vlgmr.msra.gmra.mrb[0].mxu0 %v510_v23 }
 0x25e   : > { %v609_v24 = vpop.f32.mrb[0].mxu0 }
 0x25f   : > { %615 = vst [vmem:[#allocation2] sm:$0xff] %v609_v24  ;;  %v1002_v25 = vpop.f32.mrb[1].mxu0 }
 0x260   : > { %v612_v26 = vpop.f32.mrb[2].mxu0 }
 0x261   : > { %v1003_v27 = vpop.f32.mrb[3].mxu0 }
 0x262 PF: > { %v921_v29 = vld [vmem:[%s388_s27] ss:$0 sm:$0xff]  ;;  %v651_v50 = vlaneseq  ;;  %p922_p3 = scmp.ne.s32.totalorder %s1361_s9, 1 }
 0x263   : > { %v643_v52 = vld [vmem:[%s391_s21] sm:$0x1]  ;;  %v1117_v0 = vld [vmem:[#allocation9] sm:$0xff] (!%p922_p3)   ;;  %v1294_v1 = vmov (!%p922_p3), 0.0   ;;  %v1118_v2 = vld [vmem:[#allocation9 + $0x8] sm:$0xff] (!%p922_p3)   ;;  %vm1295_vm2 = vmmov (!%p922_p3), 0  }
 0x264   : > { %v652_v51 = vshrl.u32 %v651_v50, 7  ;;  %v647_v56 = vld [vmem:[%s394_s14] sm:$0x1]  ;;  %1004 = vmatprep.subr.bf16.mxu0 (!%p922_p3), %v1294_v1  ;;  %1020 = vmatprep.mubr.msk.bf16.mxu0 (!%p922_p3), %vm1295_vm2, %v1294_v1  ;;  %v1120_v4 = vld [vmem:[#allocation9 + $0x18] sm:$0xff] (!%p922_p3)   ;;  %v1121_v5 = vld [vmem:[#allocation9 + $0x20] sm:$0xff] (!%p922_p3)  }
 0x265   : > { %1005 = vmatpush3.bf16.msra.mxu0 (!%p922_p3), %v1117_v0  ;;  %v1119_v3 = vld [vmem:[#allocation9 + $0x10] sm:$0xff] (!%p922_p3)   ;;  %v1122_v6 = vld [vmem:[#allocation9 + $0x28] sm:$0xff] (!%p922_p3)   ;;  %v1124_v8 = vld [vmem:[#allocation9 + $0x38] sm:$0xff] (!%p922_p3)  }
 0x266   : > { %v616_v28 = vld [vmem:[#allocation2] sm:$0xff]  ;;  %v653_v53 = vsub.s32 0, %v652_v51  ;;  %1006 = vmatprep.subr.bf16.mxu0 (!%p922_p3), %v1294_v1 }
 0x267   : > { %v624_v30 = vadd.f32 %v921_v29, %v616_v28  ;;  %v1123_v7 = vld [vmem:[#allocation9 + $0x30] sm:$0xff] (!%p922_p3)  }
 0x268   : > { %v923_v10 = vld [vmem:[%s1604_s7] ss:$0 sm:$0xff] (!%p922_p3) }
 0x269   : > { %v625_v31 = vmax.f32 %v624_v30, 0.0  ;;  %1007 = vmatpush3.bf16.msra.mxu0 (!%p922_p3), %v1118_v2 }
 0x26a   : > { %1008 = vmatprep.subr.bf16.mxu0 (!%p922_p3), %v1294_v1 }
 0x26b   : > { %v626_v32 = vrot.slane %v625_v31, 4  ;;  %v632_v33 = vmul.f32 %v625_v31, %v625_v31 }
 0x26d   : > { %v627_v34 = vadd.f32 %v626_v32, %v625_v31  ;;  %v633_v35 = vrot.slane %v632_v33, 4  ;;  %1009 = vmatpush3.bf16.msra.mxu0 (!%p922_p3), %v1119_v3 }
 0x26e   : > { %1010 = vmatprep.subr.bf16.mxu0 (!%p922_p3), %v1294_v1 }
 0x26f   : > { %v628_v36 = vrot.slane %v627_v34, 2  ;;  %v634_v37 = vadd.f32 %v633_v35, %v632_v33 }
 0x271   : > { %v629_v38 = vadd.f32 %v628_v36, %v627_v34  ;;  %v635_v39 = vrot.slane %v634_v37, 2  ;;  %1011 = vmatpush3.bf16.msra.mxu0 (!%p922_p3), %v1120_v4 }
 0x272   : > { %1012 = vmatprep.subr.bf16.mxu0 (!%p922_p3), %v1294_v1 }
 0x273   : > { %v630_v40 = vrot.slane %v629_v38, 1  ;;  %v636_v41 = vadd.f32 %v635_v39, %v634_v37 }
 0x275   : > { %v631_v42 = vadd.f32 %v630_v40, %v629_v38  ;;  %v637_v43 = vrot.slane %v636_v41, 1  ;;  %1013 = vmatpush3.bf16.msra.mxu0 (!%p922_p3), %v1121_v5 }
 0x276   : > { %1014 = vmatprep.subr.bf16.mxu0 (!%p922_p3), %v1294_v1 }
 0x277   : > { %v638_v44 = vadd.f32 %v637_v43, %v636_v41  ;;  %v639_v45 = vmul.f32 0.125, %v631_v42 }
 0x279   : > { %v640_v46 = vmul.f32 0.125, %v638_v44  ;;  %v641_v47 = vmul.f32 %v639_v45, %v639_v45  ;;  %1015 = vmatpush3.bf16.msra.mxu0 (!%p922_p3), %v1122_v6 }
 0x27a   : > { %1016 = vmatprep.subr.bf16.mxu0 (!%p922_p3), %v1294_v1 }
 0x27b   : > { %v642_v48 = vsub.f32 %v640_v46, %v641_v47 }
 0x27d   : > { %v644_v49 = vadd.f32 1e-05, %v642_v48  ;;  %1017 = vmatpush3.bf16.msra.mxu0 (!%p922_p3), %v1123_v7 }
 0x27e   : > { %1018 = vmatprep.subr.bf16.mxu0 (!%p922_p3), %v1294_v1 }
 0x27f   : > { %1115 = vrsqrt.f32 %v644_v49 }
 0x281   : > { %1019 = vmatpush3.bf16.msra.mxu0 (!%p922_p3), %v1124_v8 }
 0x289   : > { %v1116_v54 = vpop.eup %1115 }
 0x28a   : > { %v646_v55 = vmul.f32 %v1116_v54, %v643_v52 }
 0x28c   : > { %v648_v57 = vmul.f32 %v646_v55, %v639_v45  ;;  %v654_v58 = vrot.slane %v646_v55, %v653_v53 }
 0x28e   : > { %v649_v59 = vsub.f32 %v647_v56, %v648_v57  ;;  %v656_v60 = vmul.f32 %v654_v58, %v625_v31 }
 0x290   : > { %v661_v61 = vrot.slane %v649_v59, %v653_v53  ;;  %669 = sbr.rel (%p922_p3) target bundleno = 885 (0x375), region = 76 }
 0x292   : > { %v663_v62 = vadd.f32 %v661_v61, %v656_v60 }
 0x294   : > { %v664_v63 = vpack.c.bf16 %v663_v62, %v663_v62 }
 0x296   : > { %665 = vst [vmem:[#allocation3] sm:$0xf] %v664_v63 }
 0x29d   : > { %v670_v9 = vld [vmem:[#allocation3] sm:$0xf] }
 0x29e   : > { %1021 = vmatmul.mubr.bf16.vlgmr.msra.gmra.mrb[0].mxu0 %v670_v9 }
 0x371   : > { %v776_v11 = vpop.f32.mrb[0].mxu0 }
 0x372   : > { %v777_v12 = vadd.f32 %v923_v10, %v776_v11  ;;  %v1022_v13 = vpop.f32.mrb[1].mxu0 }
 0x373   : > { %v779_v14 = vpop.f32.mrb[2].mxu0 }
 0x374   : > { %782 = vst [vmem:[#allocation10] sm:$0xff] %v777_v12  ;;  %v1023_v15 = vpop.f32.mrb[3].mxu0 }
 0x375 PF: > { %p1054_p11 = scmp.eq.s32.totalorder %s1361_s9, 1  ;;  %s1296_s8 = smov [#allocation10]  }
 0x376   : > { %s790_s27 = sshll.u32 %s1296_s8, 4  ;;  %s791_s27 = int_to_ptr.vmem [resolvable:$true] %s790_s27 }
 0x377   : > { %s1211_s10 = scalar_lea.vmem %s791_s27, 128  ;;  %p1218_p8 = scmp.lt.s32.totalorder %s791_s27, %s791_s27 }
 0x378   : > { %p1212_p9 = scmp.ne.s32.totalorder %s791_s27, %s1211_s10  ;;  %p1219_p13 = scmp.lt.s32.totalorder %s1211_s10, %s1211_s10 }
 0x37a   : > { %p1213_p2 = pnand %p1212_p9, %p1054_p11  ;;  %p1220_p5 = por %p1219_p13, %p1218_p8 }
 0x37c   : > { %p1214_p4 = pneg %p1213_p2 }
 0x37e   : > { %p1221_p6 = pnand %p1220_p5, %p1214_p4 }
 0x380   : > { %1224 = shalt.err (!%p1221_p6)
}
 0x381   : > { %s1627_s23 = sld [smem:[#allocation15_spill]] }
 0x387   : > { %s1225_s19 = scalar_lea.hbm %s1627_s23, 128 }
 0x388   : > { %p1226_p7 = scmp.ne.s32.totalorder %s1627_s23, %s1225_s19  ;;  %p1231_p1 = scmp.lt.u32.totalorder %s1225_s19, %s1627_s23 }
 0x38a   : > { %p1227_p10 = pnand %p1226_p7, %p1054_p11 }
 0x38c   : > { %p1228_p12 = pneg %p1227_p10 }
 0x38e   : > { %p1233_p0 = pnand %p1231_p1, %p1228_p12 }
 0x390   : > { %1236 = shalt.err (!%p1233_p0)
}
 0x391   : > { %1035 = dma.vmem_to_hbm [thread:$0]  (%p1054_p11), %s791_s27, 128, %s1627_s23, [#allocation6]  }
 0x392   : > { %1266 = dma.done.wait (%p1054_p11), [#allocation6], 128  }
 0x393   : > { %1268 = vsyncadd (%p1054_p11), [#allocation6], 4294967168 }
 0x394 PF: > { %p20_p3 = scmp.ge.s32.totalorder %s1391_s15, 4   ;;  %s1628_s27 = smov %s1275_s28 }
 0x395   : > { %s1629_s28 = smov %s1279_s29  ;;  %s1630_s29 = smov %s1459_s25 }
 0x396   : > { %s1631_s30 = smov %s1391_s15  ;;  %22 = sbr.rel (!%p20_p3) target bundleno = 7 (0x7), region = 119 }
 0x39d   :  { %803 = vsyncpa [#allocation5], 1 }
 0x39e   :  { %805 = vsyncpa [#allocation5 + $0x1], 1 }
 0x39f   :  { %806 = vsyncpa [#allocation8], 1 }
 0x3a0   :  { %808 = vsyncpa [#allocation8 + $0x1], 1 }
 0x3a1   :  { %809 = vsyncpa [#allocation6], 1 }
 0x3a2   :  { %811 = vsyncpa [#allocation6 + $0x1], 1 }

</bundles_post_ra>
